<compile_context>
chip_gen: v7x
topology: tpu7x:2x2x1
jax: 0.10.0
libtpu: 0.0.40
codegen_flags: <defaults>
</compile_context>

<pallas_src>
import jax
import jax.numpy as jnp
from jax import lax
from jax.experimental import pallas as pl
from jax.experimental.pallas import tpu as pltpu

LANE = 128   # vreg lane width
SUB = 8      # f32 sublane tile


def _cdiv(a, b):
    return -(-a // b)


def _round_up(a, b):
    return _cdiv(a, b) * b


def logreg_kernel(params_ref, x_ref, o_ref):
    """Fused Linear(2, 1) + Sigmoid on one sublane-dense (R, 128) block.

    x_ref holds the flattened batch-major (B, 2) input: even lanes carry
    feature 0, odd lanes carry feature 1 of consecutive samples.  Even output
    lanes hold sigmoid(x0 * w0 + x1 * w1 + b); odd lanes are don't-care and
    are stripped by the wrapper.
    """
    w0 = params_ref[0]                    # SMEM scalars: weight[0,0], weight[0,1], bias[0]
    w1 = params_ref[1]
    b = params_ref[2]

    xv = x_ref[...].astype(jnp.float32)   # (R, 128), interleaved x0/x1

    # Per-lane weight select (VPU): even lanes * w0, odd lanes * w1.
    lane = lax.broadcasted_iota(jnp.int32, (1, LANE), 1)
    wsel = jnp.where(lane % 2 == 0, w0, w1)          # (1, 128)
    c = xv * wsel                                     # (R, 128)

    # Pair-sum neighbouring lanes onto the even lanes with a 0/1 permutation
    # matrix on the MXU (full-tile matmul, exact in any precision, MXU slot is
    # otherwise idle in this memory-bound kernel):
    #   pair[j, i] = 1  iff  i is even and j in {i, i + 1}.
    row = lax.broadcasted_iota(jnp.int32, (LANE, LANE), 0)
    col = lax.broadcasted_iota(jnp.int32, (LANE, LANE), 1)
    pair = ((col % 2 == 0) & ((row == col) | (row == col + 1))).astype(jnp.float32)
    y = jnp.dot(c, pair, preferred_element_type=jnp.float32) + b

    # Exact sigmoid as a single EUP op (no exp(-y) -> inf intermediate).
    o_ref[...] = (0.5 * jnp.tanh(0.5 * y) + 0.5).astype(o_ref.dtype)


def logistic_regression(x, weight, bias, *, max_block_rows=2048):
    """sigmoid(x @ weight.T + bias) for x: (B, 2), weight: (1, 2), bias: (1,)."""
    B, in_features = x.shape
    assert in_features == 2 and weight.shape == (1, 2) and bias.shape == (1,)

    # Keep the natural interleaved layout; only pad the flat buffer up to whole
    # (8, 128) tiles (<= 1023 extra elements).  No transpose pass over x.
    n = 2 * B
    rows = _round_up(max(_cdiv(n, LANE), 1), SUB)
    total = rows * LANE
    flat = x.reshape(-1)
    if total != n:
        flat = jnp.pad(flat, (0, total - n))
    xr = flat.reshape(rows, LANE)

    # Block rows: multiple of 8, sized for >= 4 pipelined grid steps on
    # mid/large batches, capped at 1 MiB of f32 input per step (in + out
    # double-buffered ~= 4 MiB: inside v5e's 16 MiB scoped VMEM and v7x's
    # 32 MiB default / 64 MiB physical VMEM).  The last block may run past
    # `rows`; Pallas masks the out-of-bounds writes.
    block_rows = min(max_block_rows, _round_up(_cdiv(rows, 4), SUB))
    grid = (_cdiv(rows, block_rows),)

    params = jnp.concatenate(
        [weight.reshape(-1), bias.reshape(-1)]).astype(jnp.float32)   # [w0, w1, b]

    out = pl.pallas_call(
        logreg_kernel,
        out_shape=jax.ShapeDtypeStruct((rows, LANE), x.dtype),
        grid=grid,
        in_specs=[
            pl.BlockSpec(memory_space=pltpu.MemorySpace.SMEM),       # w0, w1, b
            pl.BlockSpec((block_rows, LANE), lambda i: (i, 0)),      # dense input slab
        ],
        out_specs=pl.BlockSpec((block_rows, LANE), lambda i: (i, 0)),
        compiler_params=pltpu.CompilerParams(
            dimension_semantics=("parallel",),
        ),
    )(params, xr)

    # Valid results sit at even flat positions (one per sample).
    return out.reshape(-1)[0:n:2].reshape(B, 1)


if __name__ == "__main__":
    key = jax.random.PRNGKey(0)
    kx, kw, kb, kx2 = jax.random.split(key, 4)

    IN, OUT = 2, 1
    # torch.nn.Linear(2, 1) init: U(-1/sqrt(in_features), 1/sqrt(in_features)).
    bound = 1.0 / jnp.sqrt(jnp.float32(IN))
    weight = jax.random.uniform(kw, (OUT, IN), jnp.float32, -bound, bound)
    bias = jax.random.uniform(kb, (OUT,), jnp.float32, -bound, bound)

    # Small demo batch matching the module's (B, 2) -> (B, 1) forward.
    B = 8
    x = jax.random.normal(kx, (B, IN), jnp.float32)
    out = jax.block_until_ready(logistic_regression(x, weight, bias))
    ref = jax.nn.sigmoid(x @ weight.T + bias)
    assert out.shape == (B, OUT)
    assert jnp.allclose(out, ref, atol=1e-3, rtol=1e-3), "mismatch vs reference (B=8)"

    # Second check exercising the multi-block pipelined path.
    B2 = 1024
    x2 = jax.random.normal(kx2, (B2, IN), jnp.float32)
    out2 = jax.block_until_ready(logistic_regression(x2, weight, bias))
    ref2 = jax.nn.sigmoid(x2 @ weight.T + bias)
    assert out2.shape == (B2, OUT)
    assert jnp.allclose(out2, ref2, atol=1e-3, rtol=1e-3), "mismatch vs reference (B=1024)"

    print("KERNEL_OK")
</pallas_src>

<mosaic_0001>
module attributes {stable_mosaic.version = 11 : i64} {
  func.func @logreg_kernel(%arg0: i32, %arg1: memref<3xf32, #tpu.memory_space<smem>>, %arg2: memref<8x128xf32, #tpu.memory_space<vmem>>, %arg3: memref<8x128xf32, #tpu.memory_space<vmem>>) attributes {dimension_semantics = [#tpu.dimension_semantics<parallel>], iteration_bounds = array<i64: 1>, scalar_prefetch = 0 : i64, scratch_operands = 0 : i64, tpu.core_type = #tpu.core_type<tc>, window_params = [{transform_indices = @transform_0, window_bounds = array<i64: 3>}, {transform_indices = @transform_1, window_bounds = array<i64: 8, 128>}, {transform_indices = @transform_2, window_bounds = array<i64: 8, 128>}]} {
    %c0 = arith.constant 0 : index
    %0 = memref.load %arg1[%c0] : memref<3xf32, #tpu.memory_space<smem>>
    %c1 = arith.constant 1 : index
    %1 = memref.load %arg1[%c1] : memref<3xf32, #tpu.memory_space<smem>>
    %c2 = arith.constant 2 : index
    %2 = memref.load %arg1[%c2] : memref<3xf32, #tpu.memory_space<smem>>
    %c0_0 = arith.constant 0 : index
    %c0_1 = arith.constant 0 : index
    %3 = vector.load %arg2[%c0_0, %c0_1] : memref<8x128xf32, #tpu.memory_space<vmem>>, vector<8x128xf32>
    %4 = tpu.iota {dimensions = array<i32: 1>} : vector<1x128xi32>
    %c2_i32 = arith.constant 2 : i32
    %c0_i32 = arith.constant 0 : i32
    %5 = arith.cmpi eq, %c2_i32, %c0_i32 : i32
    %c1_i32 = arith.constant 1 : i32
    %6 = arith.select %5, %c1_i32, %c2_i32 : i32
    %7 = vector.broadcast %6 : i32 to vector<1x128xi32>
    %8 = arith.remsi %4, %7 : vector<1x128xi32>
    %c0_i32_2 = arith.constant 0 : i32
    %9 = vector.broadcast %c0_i32_2 : i32 to vector<1x128xi32>
    %10 = arith.cmpi ne, %8, %9 : vector<1x128xi32>
    %c0_i32_3 = arith.constant 0 : i32
    %11 = vector.broadcast %c0_i32_3 : i32 to vector<1x128xi32>
    %12 = arith.cmpi slt, %8, %11 : vector<1x128xi32>
    %c0_i32_4 = arith.constant 0 : i32
    %13 = arith.cmpi slt, %6, %c0_i32_4 : i32
    %14 = vector.broadcast %13 : i1 to vector<1x128xi1>
    %15 = vector.broadcast %14 : vector<1x128xi1> to vector<1x128xi1>
    %16 = arith.xori %12, %15 : vector<1x128xi1>
    %17 = arith.andi %16, %10 : vector<1x128xi1>
    %18 = vector.broadcast %6 : i32 to vector<1x128xi32>
    %19 = arith.addi %8, %18 : vector<1x128xi32>
    %20 = arith.select %17, %19, %8 : vector<1x128xi1>, vector<1x128xi32>
    %c0_i32_5 = arith.constant 0 : i32
    %21 = vector.broadcast %c0_i32_5 : i32 to vector<1x128xi32>
    %22 = arith.cmpi eq, %20, %21 : vector<1x128xi32>
    %23 = vector.broadcast %0 : f32 to vector<1x128xf32>
    %24 = vector.broadcast %1 : f32 to vector<1x128xf32>
    %25 = arith.select %22, %23, %24 : vector<1x128xi1>, vector<1x128xf32>
    %26 = vector.broadcast %25 : vector<1x128xf32> to vector<8x128xf32>
    %27 = arith.mulf %3, %26 : vector<8x128xf32>
    %28 = tpu.iota {dimensions = array<i32: 0>} : vector<128x128xi32>
    %29 = tpu.iota {dimensions = array<i32: 1>} : vector<128x128xi32>
    %c2_i32_6 = arith.constant 2 : i32
    %c0_i32_7 = arith.constant 0 : i32
    %30 = arith.cmpi eq, %c2_i32_6, %c0_i32_7 : i32
    %c1_i32_8 = arith.constant 1 : i32
    %31 = arith.select %30, %c1_i32_8, %c2_i32_6 : i32
    %32 = vector.broadcast %31 : i32 to vector<128x128xi32>
    %33 = arith.remsi %29, %32 : vector<128x128xi32>
    %c0_i32_9 = arith.constant 0 : i32
    %34 = vector.broadcast %c0_i32_9 : i32 to vector<128x128xi32>
    %35 = arith.cmpi ne, %33, %34 : vector<128x128xi32>
    %c0_i32_10 = arith.constant 0 : i32
    %36 = vector.broadcast %c0_i32_10 : i32 to vector<128x128xi32>
    %37 = arith.cmpi slt, %33, %36 : vector<128x128xi32>
    %c0_i32_11 = arith.constant 0 : i32
    %38 = arith.cmpi slt, %31, %c0_i32_11 : i32
    %39 = vector.broadcast %38 : i1 to vector<128x128xi1>
    %40 = vector.broadcast %39 : vector<128x128xi1> to vector<128x128xi1>
    %41 = arith.xori %37, %40 : vector<128x128xi1>
    %42 = arith.andi %41, %35 : vector<128x128xi1>
    %43 = vector.broadcast %31 : i32 to vector<128x128xi32>
    %44 = arith.addi %33, %43 : vector<128x128xi32>
    %45 = arith.select %42, %44, %33 : vector<128x128xi1>, vector<128x128xi32>
    %c0_i32_12 = arith.constant 0 : i32
    %46 = vector.broadcast %c0_i32_12 : i32 to vector<128x128xi32>
    %47 = arith.cmpi eq, %45, %46 : vector<128x128xi32>
    %48 = arith.cmpi eq, %28, %29 : vector<128x128xi32>
    %c1_i32_13 = arith.constant 1 : i32
    %49 = vector.broadcast %c1_i32_13 : i32 to vector<128x128xi32>
    %50 = arith.addi %29, %49 : vector<128x128xi32>
    %51 = arith.cmpi eq, %28, %50 : vector<128x128xi32>
    %52 = arith.ori %48, %51 : vector<128x128xi1>
    %53 = arith.andi %47, %52 : vector<128x128xi1>
    %54 = arith.extui %53 : vector<128x128xi1> to vector<128x128xi32>
    %55 = arith.sitofp %54 : vector<128x128xi32> to vector<128x128xf32>
    %cst = arith.constant dense<0.000000e+00> : vector<8x128xf32>
    %56 = tpu.matmul %27, %55, %cst {dimension_numbers = #tpu.dot_dimension_numbers<[1], [0], [0], [1], [0, 0, 1, 1], [], []>} : vector<8x128xf32>, vector<128x128xf32>, vector<8x128xf32> -> vector<8x128xf32>
    %57 = vector.broadcast %2 : f32 to vector<8x128xf32>
    %58 = arith.addf %56, %57 : vector<8x128xf32>
    %cst_14 = arith.constant 5.000000e-01 : f32
    %59 = vector.broadcast %cst_14 : f32 to vector<8x128xf32>
    %60 = arith.mulf %59, %58 : vector<8x128xf32>
    %61 = math.tanh %60 : vector<8x128xf32>
    %cst_15 = arith.constant 5.000000e-01 : f32
    %62 = vector.broadcast %cst_15 : f32 to vector<8x128xf32>
    %63 = arith.mulf %62, %61 : vector<8x128xf32>
    %cst_16 = arith.constant 5.000000e-01 : f32
    %64 = vector.broadcast %cst_16 : f32 to vector<8x128xf32>
    %65 = arith.addf %63, %64 : vector<8x128xf32>
    %c0_17 = arith.constant 0 : index
    %c0_18 = arith.constant 0 : index
    %66 = vector.load %arg3[%c0_17, %c0_18] : memref<8x128xf32, #tpu.memory_space<vmem>>, vector<8x128xf32>
    tpu.vector_store %arg3[%c0_17, %c0_18], %65 {strides = array<i32>} : memref<8x128xf32, #tpu.memory_space<vmem>>, vector<8x128xf32>,
    return
  }
  func.func @transform_0(%arg0: i32) -> i32 {
    %c0_i32 = arith.constant 0 : i32
    %c0_i32_0 = arith.constant 0 : i32
    return %c0_i32 : i32
  }
  func.func @transform_1(%arg0: i32) -> (i32, i32) {
    %c0_i32 = arith.constant 0 : i32
    %c0_i32_0 = arith.constant 0 : i32
    return %arg0, %c0_i32 : i32, i32
  }
  func.func @transform_2(%arg0: i32) -> (i32, i32) {
    %c0_i32 = arith.constant 0 : i32
    %c0_i32_0 = arith.constant 0 : i32
    return %arg0, %c0_i32 : i32, i32
  }
}

</mosaic_0001>

<bundles_post_ra>
// kernel: tpu_custom_call.1
= control target key start
LH: loop header
LB: loop body
LE: loop exit
PB: predicated region body
PF: predicated region fallthrough
CT: control target
= control target key end

     0   :  { %7 = vsyncpa [#allocation5], 0  ;;  %s615_s0 = inlined_call_operand.hbm [shape: f32[3], index: 0, kind: input, shape index: {}]   ;;  %s616_s1 = inlined_call_operand.hbm [shape: f32[8,128], index: 1, kind: input, shape index: {}]   ;;  %s617_s2 = inlined_call_operand.hbm [shape: f32[8,128], index: 2, kind: output, shape index: {}]  }
   0x1   :  { %8 = vsyncpa [#allocation3], 0 }
   0x2   :  { %9 = vsyncpa [#allocation4], 0  ;;  %s383_s11 = scalar_lea.hbm %s615_s0, 16 }
   0x3   :  { %p384_p0 = scmp.ne.s32.totalorder %s615_s0, %s383_s11  ;;  %p387_p1 = scmp.lt.u32.totalorder %s383_s11, %s615_s0 }
   0x5   :  { %p389_p2 = pnand %p387_p1, %p384_p0 }
   0x7   :  { %392 = shalt.err (!%p389_p2)
}
   0x8   :  { %s443_s16 = smov [#allocation2]   ;;  %s444_s19 = smov [#allocation6]  }
   0x9   :  { %17 = dma.hbm_to_smem %s615_s0, 16, %s443_s16, [#allocation5]  }
   0xa   :  { %s24_s20 = sshll.u32 %s444_s19, 4  ;;  %s393_s23 = scalar_lea.hbm %s616_s1, 128  ;;  %s25_s20 = int_to_ptr.vmem [resolvable:$true] %s24_s20 }
   0xb   :  { %p394_p3 = scmp.ne.s32.totalorder %s616_s1, %s393_s23  ;;  %p397_p4 = scmp.lt.u32.totalorder %s393_s23, %s616_s1 }
   0xd   :  { %p399_p5 = pnand %p397_p4, %p394_p3 }
   0xf   :  { %402 = shalt.err (!%p399_p5)
}
  0x10   :  { %s403_s28 = scalar_lea.vmem %s25_s20, 128  ;;  %p408_p7 = scmp.lt.s32.totalorder %s25_s20, %s25_s20 }
  0x11   :  { %p404_p6 = scmp.ne.s32.totalorder %s25_s20, %s403_s28  ;;  %p409_p8 = scmp.lt.s32.totalorder %s403_s28, %s403_s28 }
  0x13   :  { %p410_p9 = por %p409_p8, %p408_p7 }
  0x15   :  { %p411_p10 = pnand %p410_p9, %p404_p6 }
  0x17   :  { %414 = shalt.err (!%p411_p10)
}
  0x18   :  { %27 = dma.hbm_to_vmem [thread:$0]  %s616_s1, 128, %s25_s20, [#allocation3]  }
  0x19   :  { %437 = dma.done.wait [#allocation5], 16  }
  0x1a   :  { %438 = vsyncadd [#allocation5], 4294967280 }
  0x1b   :  { %439 = dma.done.wait [#allocation3], 128  }
  0x1c   :  { %440 = vsyncadd [#allocation3], 4294967168 }
  0x1d   :  { %34 = sfence }
  0x1e   :  { %v39_v0 = vlaneseq  ;;  %v445_v1 = vmov 0.0|0.0   ;;  %vm446_vm0 = vmmov 0   ;;  %v447_v4 = vmov 0.0   ;;  %s570_s1 = sld [smem:[#allocation2]]  ;;  %s264_s30 = sld [smem:[#allocation2 + $0x1]]  ;;  %v38_v26 = vld [vmem:[#allocation6] sm:$0xff] }
  0x1f   :  { %350 = vmatprep.subr.bf16.mxu0 %v445_v1  ;;  %347 = vmatprep.mubr.msk.f32.mxu0 %vm446_vm0, %v447_v4  ;;  %v448_v13 = vmov 1.0|1.0   ;;  %s265_s3 = sld [smem:[#allocation2 + $0x2]]  ;;  %s449_s4 = smov [#allocation7]  }
  0x20   :  { %v490_v2 = vand.u32 127, %v39_v0  ;;  %v492_v3 = vshrl.u32 %v39_v0, 7  ;;  %s254_s5 = sshll.u32 %s449_s4, 4  ;;  %s255_s5 = int_to_ptr.vmem [resolvable:$true] %s254_s5 }
  0x21   :  { %s415_s6 = scalar_lea.vmem %s255_s5, 128  ;;  %p420_p12 = scmp.lt.s32.totalorder %s255_s5, %s255_s5 }
  0x22   :  { %v45_v5 = vand.u32 1, %v490_v2  ;;  %v60_v6 = vadd.s32 8, %v492_v3  ;;  %vm75_vm1 = vcmp.eq.s32.totalorder %v492_v3, %v490_v2  ;;  %v499_v7 = vadd.s32 1, %v490_v2  ;;  %p416_p11 = scmp.ne.s32.totalorder %s255_s5, %s415_s6  ;;  %p421_p13 = scmp.lt.s32.totalorder %s415_s6, %s415_s6 }
  0x23   :  { %v61_v8 = vadd.s32 16, %v492_v3  ;;  %v62_v9 = vadd.s32 24, %v492_v3  ;;  %v63_v11 = vadd.s32 32, %v492_v3  ;;  %v64_v12 = vadd.s32 40, %v492_v3 }
  0x24   :  { %vm503_vm2 = vcmp.eq.s32.totalorder %v45_v5, 0  ;;  %vm76_vm3 = vcmp.eq.s32.totalorder %v60_v6, %v490_v2  ;;  %vm92_vm4 = vcmp.eq.s32.totalorder %v492_v3, %v499_v7  ;;  %vm93_vm5 = vcmp.eq.s32.totalorder %v60_v6, %v499_v7  ;;  %p422_p0 = por %p421_p13, %p420_p12 }
  0x25   :  { %vm108_vm6 = vmor %vm75_vm1, %vm92_vm4  ;;  %vm77_vm9 = vcmp.eq.s32.totalorder %v61_v8, %v490_v2  ;;  %vm94_vm10 = vcmp.eq.s32.totalorder %v61_v8, %v499_v7  ;;  %vm78_vm12 = vcmp.eq.s32.totalorder %v62_v9, %v490_v2  ;;  %vm95_vm13 = vcmp.eq.s32.totalorder %v62_v9, %v499_v7 }
  0x26   :  { %vm109_vm7 = vmor %vm76_vm3, %vm93_vm5  ;;  %vm79_vm3 = vcmp.eq.s32.totalorder %v63_v11, %v490_v2  ;;  %vm96_vm4 = vcmp.eq.s32.totalorder %v63_v11, %v499_v7  ;;  %v65_v14 = vadd.s32 48, %v492_v3  ;;  %v66_v15 = vadd.s32 56, %v492_v3  ;;  %p423_p1 = pnand %p422_p0, %p416_p11 }
  0x27   :  { %vm124_vm8 = vmand %vm503_vm2, %vm108_vm6  ;;  %vm80_vm6 = vcmp.eq.s32.totalorder %v64_v12, %v490_v2  ;;  %v67_v16 = vadd.s32 64, %v492_v3  ;;  %v68_v17 = vadd.s32 72, %v492_v3  ;;  %v69_v18 = vadd.s32 80, %v492_v3 }
  0x28   :  { %vm125_vm11 = vmand %vm503_vm2, %vm109_vm7  ;;  %vm97_vm7 = vcmp.eq.s32.totalorder %v64_v12, %v499_v7  ;;  %v70_v19 = vadd.s32 88, %v492_v3  ;;  %v71_v20 = vadd.s32 96, %v492_v3  ;;  %v72_v21 = vadd.s32 104, %v492_v3 }
  0x29   :  { %vm351_vm14 = vmpackc.low %vm125_vm11, %vm124_vm8  ;;  %v73_v22 = vadd.s32 112, %v492_v3  ;;  %v74_v23 = vadd.s32 120, %v492_v3  ;;  %v54_v24 = vstv %s570_s1  ;;  %v55_v25 = vstv %s264_s30 }
  0x2a   :  { %352 = vmatpush3.bf16.msk.msra.mxu0 %vm351_vm14, %v448_v13  ;;  %vm110_vm15 = vmor %vm77_vm9, %vm94_vm10  ;;  %v56_v27 = vsel %vm503_vm2, %v54_v24, %v55_v25  ;;  %v172_v29 = vstv %s265_s3 }
  0x2b   :  { %353 = vmatprep.subr.bf16.mxu0 %v445_v1  ;;  %vm111_vm0 = vmor %vm78_vm12, %vm95_vm13  ;;  %vm81_vm12 = vcmp.eq.s32.totalorder %v65_v14, %v490_v2  ;;  %vm98_vm13 = vcmp.eq.s32.totalorder %v65_v14, %v499_v7  ;;  %v57_v28 = vmul.f32 %v56_v27, %v38_v26 }
  0x2c   :  { %vm126_vm1 = vmand %vm503_vm2, %vm110_vm15  ;;  %vm82_vm15 = vcmp.eq.s32.totalorder %v66_v15, %v490_v2 }
  0x2d   :  { %vm127_vm5 = vmand %vm503_vm2, %vm111_vm0  ;;  %vm99_vm0 = vcmp.eq.s32.totalorder %v66_v15, %v499_v7 }
  0x2e   :  { %vm354_vm8 = vmpackc.low %vm127_vm5, %vm126_vm1 }
  0x2f   :  { %355 = vmatpush3.bf16.msk.msra.mxu0 %vm354_vm8, %v448_v13  ;;  %vm112_vm9 = vmor %vm79_vm3, %vm96_vm4 }
  0x30   :  { %356 = vmatprep.subr.bf16.mxu0 %v445_v1  ;;  %vm113_vm10 = vmor %vm80_vm6, %vm97_vm7  ;;  %vm83_vm6 = vcmp.eq.s32.totalorder %v67_v16, %v490_v2  ;;  %vm100_vm7 = vcmp.eq.s32.totalorder %v67_v16, %v499_v7 }
  0x31   :  { %vm128_vm11 = vmand %vm503_vm2, %vm112_vm9  ;;  %vm84_vm9 = vcmp.eq.s32.totalorder %v68_v17, %v490_v2 }
  0x32   :  { %vm129_vm14 = vmand %vm503_vm2, %vm113_vm10  ;;  %vm101_vm10 = vcmp.eq.s32.totalorder %v68_v17, %v499_v7 }
  0x33   :  { %vm357_vm1 = vmpackc.low %vm129_vm14, %vm128_vm11 }
  0x34   :  { %358 = vmatpush3.bf16.msk.msra.mxu0 %vm357_vm1, %v448_v13  ;;  %vm114_vm3 = vmor %vm81_vm12, %vm98_vm13 }
  0x35   :  { %359 = vmatprep.subr.bf16.mxu0 %v445_v1  ;;  %vm115_vm4 = vmor %vm82_vm15, %vm99_vm0  ;;  %vm85_vm15 = vcmp.eq.s32.totalorder %v69_v18, %v490_v2  ;;  %vm102_vm0 = vcmp.eq.s32.totalorder %v69_v18, %v499_v7 }
  0x36   :  { %vm130_vm5 = vmand %vm503_vm2, %vm114_vm3  ;;  %vm86_vm3 = vcmp.eq.s32.totalorder %v70_v19, %v490_v2 }
  0x37   :  { %vm131_vm8 = vmand %vm503_vm2, %vm115_vm4  ;;  %vm103_vm4 = vcmp.eq.s32.totalorder %v70_v19, %v499_v7 }
  0x38   :  { %vm360_vm11 = vmpackc.low %vm131_vm8, %vm130_vm5 }
  0x39   :  { %361 = vmatpush3.bf16.msk.msra.mxu0 %vm360_vm11, %v448_v13  ;;  %vm116_vm12 = vmor %vm83_vm6, %vm100_vm7 }
  0x3a   :  { %362 = vmatprep.subr.bf16.mxu0 %v445_v1  ;;  %vm117_vm13 = vmor %vm84_vm9, %vm101_vm10  ;;  %vm87_vm9 = vcmp.eq.s32.totalorder %v71_v20, %v490_v2  ;;  %vm104_vm10 = vcmp.eq.s32.totalorder %v71_v20, %v499_v7 }
  0x3b   :  { %vm132_vm14 = vmand %vm503_vm2, %vm116_vm12  ;;  %vm88_vm12 = vcmp.eq.s32.totalorder %v72_v21, %v490_v2 }
  0x3c   :  { %vm133_vm1 = vmand %vm503_vm2, %vm117_vm13  ;;  %vm105_vm13 = vcmp.eq.s32.totalorder %v72_v21, %v499_v7 }
  0x3d   :  { %vm363_vm5 = vmpackc.low %vm133_vm1, %vm132_vm14 }
  0x3e   :  { %364 = vmatpush3.bf16.msk.msra.mxu0 %vm363_vm5, %v448_v13  ;;  %vm118_vm6 = vmor %vm85_vm15, %vm102_vm0 }
  0x3f   :  { %365 = vmatprep.subr.bf16.mxu0 %v445_v1  ;;  %vm119_vm7 = vmor %vm86_vm3, %vm103_vm4  ;;  %vm89_vm3 = vcmp.eq.s32.totalorder %v73_v22, %v490_v2  ;;  %vm106_vm4 = vcmp.eq.s32.totalorder %v73_v22, %v499_v7 }
  0x40   :  { %vm134_vm8 = vmand %vm503_vm2, %vm118_vm6  ;;  %vm90_vm6 = vcmp.eq.s32.totalorder %v74_v23, %v490_v2 }
  0x41   :  { %vm135_vm11 = vmand %vm503_vm2, %vm119_vm7  ;;  %vm107_vm7 = vcmp.eq.s32.totalorder %v74_v23, %v499_v7 }
  0x42   :  { %vm366_vm14 = vmpackc.low %vm135_vm11, %vm134_vm8 }
  0x43   :  { %367 = vmatpush3.bf16.msk.msra.mxu0 %vm366_vm14, %v448_v13  ;;  %vm120_vm15 = vmor %vm87_vm9, %vm104_vm10 }
  0x44   :  { %368 = vmatprep.subr.bf16.mxu0 %v445_v1  ;;  %vm121_vm0 = vmor %vm88_vm12, %vm105_vm13 }
  0x45   :  { %vm136_vm1 = vmand %vm503_vm2, %vm120_vm15 }
  0x46   :  { %vm137_vm5 = vmand %vm503_vm2, %vm121_vm0 }
  0x47   :  { %vm369_vm8 = vmpackc.low %vm137_vm5, %vm136_vm1 }
  0x48   :  { %370 = vmatpush3.bf16.msk.msra.mxu0 %vm369_vm8, %v448_v13  ;;  %vm122_vm9 = vmor %vm89_vm3, %vm106_vm4 }
  0x49   :  { %371 = vmatprep.subr.bf16.mxu0 %v445_v1  ;;  %vm123_vm10 = vmor %vm90_vm6, %vm107_vm7 }
  0x4a   :  { %vm138_vm11 = vmand %vm503_vm2, %vm122_vm9 }
  0x4b   :  { %vm139_vm12 = vmand %vm503_vm2, %vm123_vm10 }
  0x4c   :  { %vm372_vm13 = vmpackc.low %vm139_vm12, %vm138_vm11 }
  0x4d   :  { %373 = vmatpush3.bf16.msk.msra.mxu0 %vm372_vm13, %v448_v13 }
  0x50   :  { %348 = vmatmul.mubr.f32.vlgmr.msra.gmra.mrb[0].mxu0 %v57_v28 }
 0x123   :  { %v239_v30 = vpop.f32.mrb[0].mxu0 }
 0x124   :  { %v240_v31 = vadd.f32 %v239_v30, %v172_v29  ;;  %v349_v32 = vpop.f32.mrb[1].mxu0 }
 0x126   :  { %v243_v33 = vmul.f32 0.5, %v240_v31 }
 0x128   :  { %381 = vtanh.f32 %v243_v33 }
 0x132   :  { %v382_v34 = vpop.eup %381 }
 0x133   :  { %v245_v35 = vmul.f32 0.5, %v382_v34 }
 0x135   :  { %v246_v36 = vadd.f32 0.5, %v245_v35 }
 0x137   :  { %247 = vst [vmem:[#allocation7] sm:$0xff] %v246_v36 }
 0x138   :  { %426 = shalt.err (!%p423_p1)
}
 0x139   :  { %s427_s9 = scalar_lea.hbm %s617_s2, 128 }
 0x13a   :  { %p428_p2 = scmp.ne.s32.totalorder %s617_s2, %s427_s9  ;;  %p431_p3 = scmp.lt.u32.totalorder %s427_s9, %s617_s2 }
 0x13c   :  { %p433_p4 = pnand %p431_p3, %p428_p2 }
 0x13e   :  { %436 = shalt.err (!%p433_p4)
}
 0x13f   :  { %257 = dma.vmem_to_hbm [thread:$0]  %s255_s5, 128, %s617_s2, [#allocation4]  }
 0x140   :  { %441 = dma.done.wait [#allocation4], 128  }
 0x141   :  { %442 = vsyncadd [#allocation4], 4294967168 }
 0x142   :  { %261 = vsyncpa [#allocation3], 1 }
 0x143   :  { %262 = vsyncpa [#allocation4], 1 }
 0x144   :  { %263 = vsyncpa [#allocation5], 1 }

</bundles_post_ra>
